<compile_context>
chip_gen: v7x
topology: tpu7x:2x2x1
jax: 0.10.0
libtpu: 0.0.40
codegen_flags: <defaults>
</compile_context>

<pallas_src>
from functools import partial

import jax
import jax.numpy as jnp
from jax.experimental import pallas as pl
from jax.experimental.pallas import tpu as pltpu

EPS = 1e-5
_MIB = 1024 * 1024


def _round_up(x, m):
    return ((x + m - 1) // m) * m


def _vmem_capacity_bytes():
    # Per-TensorCore VMEM; conservative fallback (v7x, 64 MiB) if the query fails.
    try:
        return int(pltpu.get_tpu_info().vmem_capacity_bytes)
    except Exception:
        return 64 * _MIB


def _invariant_spec(block_shape, index_map):
    # Grid-invariant block (constant index_map): single-buffer it, no re-DMA needed.
    try:
        return pl.BlockSpec(block_shape, index_map, pipeline_mode=pl.Buffered(1))
    except (AttributeError, TypeError):
        return pl.BlockSpec(block_shape, index_map)


def _layernorm_f32(x):
    # One-pass statistics: sum and sum-of-squares reduce independently.
    d = x.shape[-1]
    inv_d = 1.0 / d
    s = jnp.sum(x, axis=-1, keepdims=True)
    ss = jnp.sum(x * x, axis=-1, keepdims=True)
    mean = s * inv_d
    var = jnp.maximum(ss * inv_d - mean * mean, 0.0)
    return (x - mean) * jax.lax.rsqrt(var + EPS)


def _norm_mix_store(residual_f32, w_ref, b_ref, hs_out_ref, res_out_ref):
    normed = _layernorm_f32(residual_f32)
    # gamma/beta are folded into (w_ref, b_ref) on the host, so no affine here.
    mixed = jnp.dot(normed.astype(w_ref.dtype), w_ref[...],
                    preferred_element_type=jnp.float32)
    mixed = mixed + b_ref[...].astype(jnp.float32)
    hs_out_ref[...] = mixed.astype(hs_out_ref.dtype)
    res_out_ref[...] = residual_f32.astype(res_out_ref.dtype)


# ----------------- path A: full weight resident in VMEM (1-D row grid) -----------------

def _kernel_resident_add(h_ref, r_ref, w_ref, b_ref, hs_out_ref, res_out_ref):
    residual = h_ref[...].astype(jnp.float32) + r_ref[...].astype(jnp.float32)
    _norm_mix_store(residual, w_ref, b_ref, hs_out_ref, res_out_ref)


def _kernel_resident_noadd(h_ref, w_ref, b_ref, hs_out_ref, res_out_ref):
    residual = h_ref[...].astype(jnp.float32)
    _norm_mix_store(residual, w_ref, b_ref, hs_out_ref, res_out_ref)


# ----------------- path B: N-tiled weight (2-D grid: row tiles x N tiles) --------------

def _mix_tile_store(n_idx, residual_fn, w_ref, b_ref, hs_out_ref, res_out_ref,
                    normed_ref):
    @pl.when(n_idx == 0)
    def _():
        residual = residual_fn()
        res_out_ref[...] = residual.astype(res_out_ref.dtype)
        normed_ref[...] = _layernorm_f32(residual).astype(normed_ref.dtype)

    mixed = jnp.dot(normed_ref[...], w_ref[...], preferred_element_type=jnp.float32)
    hs_out_ref[...] = (mixed + b_ref[...].astype(jnp.float32)).astype(hs_out_ref.dtype)


def _kernel_ntiled_add(h_ref, r_ref, w_ref, b_ref, hs_out_ref, res_out_ref, normed_ref):
    _mix_tile_store(
        pl.program_id(1),
        lambda: h_ref[...].astype(jnp.float32) + r_ref[...].astype(jnp.float32),
        w_ref, b_ref, hs_out_ref, res_out_ref, normed_ref)


def _kernel_ntiled_noadd(h_ref, w_ref, b_ref, hs_out_ref, res_out_ref, normed_ref):
    _mix_tile_store(
        pl.program_id(1),
        lambda: h_ref[...].astype(jnp.float32),
        w_ref, b_ref, hs_out_ref, res_out_ref, normed_ref)


# --------------------------------- host wrapper ----------------------------------------

def block_forward(hidden_states, residual, params, *,
                  residual_in_fp32=True, row_tile=None,
                  mixer_dtype=jnp.bfloat16, n_tile=None):
    B, L, D = hidden_states.shape
    rows = B * L
    in_dtype = hidden_states.dtype
    in_bytes = jnp.dtype(in_dtype).itemsize
    sub = max(8, 32 // in_bytes)                 # sublane packing for the input dtype
    has_residual = residual is not None
    n_streams = 2 if has_residual else 1

    # ---- host-side parameter folding: LN affine absorbed into the mixer --------------
    #   LN(x)*g + b  followed by  y @ W + c   ==   LN(x) @ (g[:,None]*W) + (b@W + c)
    gamma = params["norm_weight"].astype(jnp.float32)
    beta = params["norm_bias"].astype(jnp.float32)
    mw = params["mixer_weight"].astype(jnp.float32)            # (D, D)
    mb = params["mixer_bias"].astype(jnp.float32)              # (D,)
    w_dtype = jnp.dtype(mixer_dtype) if mixer_dtype is not None \
        else jnp.dtype(params["mixer_weight"].dtype)
    w_folded = (gamma[:, None] * mw).astype(w_dtype)            # (D, D)
    b_folded = (beta @ mw + mb).reshape(1, D).astype(jnp.float32)

    w_bytes = jnp.dtype(w_dtype).itemsize
    res_dtype = jnp.float32 if residual_in_fp32 else in_dtype
    res_bytes = jnp.dtype(res_dtype).itemsize
    Dp = _round_up(D, 128)
    D8 = _round_up(D, 8)

    # ---- generation-aware VMEM budgeting ----------------------------------------------
    vmem_cap = _vmem_capacity_bytes()             # 128 MiB v5e/v6e, 64 MiB v7x (per TC)
    vmem_budget = (vmem_cap * 3) // 4             # working-set budget
    vmem_limit_cap = (vmem_cap * 7) // 8          # never the full physical VMEM

    if row_tile is None:
        row_tile = 1024 if D <= 1024 else 512
    tile0 = min(_round_up(row_tile, sub), _round_up(rows, sub))

    def vmem_resident(t):
        n_in = n_streams * 2 * t * Dp * in_bytes                  # double-buffered rows
        n_w = D8 * Dp * w_bytes + 8 * Dp * 4                      # single-buffered W, b
        n_out = 2 * t * Dp * (in_bytes + res_bytes)               # double-buffered outs
        return n_in + n_w + n_out

    def vmem_ntiled(t, tn):
        n_in = n_streams * 2 * t * Dp * in_bytes
        n_w = 2 * D8 * tn * w_bytes + 2 * 8 * tn * 4              # double-buffered W tile
        n_scr = t * Dp * w_bytes                                  # cached LN output
        n_out = 2 * t * tn * in_bytes + 2 * t * Dp * res_bytes
        return n_in + n_w + n_scr + n_out

    use_ntiled = n_tile is not None
    if not use_ntiled:
        # If keeping the full weight resident would force the row tile below ~256,
        # switch to the N-tiled weight path instead of collapsing the row tile.
        probe = max(sub, min(tile0, _round_up(256, sub)))
        use_ntiled = vmem_resident(probe) > vmem_budget

    h2 = hidden_states.reshape(rows, D)
    r2 = residual.reshape(rows, D) if has_residual else None

    if not use_ntiled:
        # ----------------------------- resident-weight path ---------------------------
        tile = tile0
        while tile > sub and vmem_resident(tile) > vmem_budget:
            tile = max(sub, _round_up(tile // 2, sub))
        grid = (pl.cdiv(rows, tile),)

        inputs = [h2]
        in_specs = [pl.BlockSpec((tile, D), lambda i: (i, 0))]
        if has_residual:
            inputs.append(r2)
            in_specs.append(pl.BlockSpec((tile, D), lambda i: (i, 0)))
        inputs += [w_folded, b_folded]
        in_specs += [_invariant_spec((D, D), lambda i: (0, 0)),
                     _invariant_spec((1, D), lambda i: (0, 0))]
        out_specs = (pl.BlockSpec((tile, D), lambda i: (i, 0)),
                     pl.BlockSpec((tile, D), lambda i: (i, 0)))
        scratch_shapes = []
        kernel = _kernel_resident_add if has_residual else _kernel_resident_noadd
        dim_sem = ("parallel",)
        vmem_needed = vmem_resident(tile)
    else:
        # ------------------------------ N-tiled weight path ---------------------------
        if n_tile is not None:
            tn = min(max(128, _round_up(n_tile, 128)), Dp)
        else:
            tn = min(Dp, 512)
        tile = tile0
        while vmem_ntiled(tile, tn) > vmem_budget:
            if n_tile is None and tn > 128:
                tn = max(128, _round_up(tn // 2, 128))
            elif tile > sub:
                tile = max(sub, _round_up(tile // 2, sub))
            else:
                break
        grid = (pl.cdiv(rows, tile), pl.cdiv(D, tn))

        inputs = [h2]
        in_specs = [pl.BlockSpec((tile, D), lambda i, n: (i, 0))]
        if has_residual:
            inputs.append(r2)
            in_specs.append(pl.BlockSpec((tile, D), lambda i, n: (i, 0)))
        inputs += [w_folded, b_folded]
        in_specs += [pl.BlockSpec((D, tn), lambda i, n: (0, n)),
                     pl.BlockSpec((1, tn), lambda i, n: (0, n))]
        out_specs = (pl.BlockSpec((tile, tn), lambda i, n: (i, n)),
                     pl.BlockSpec((tile, D), lambda i, n: (i, 0)))
        scratch_shapes = [pltpu.VMEM((tile, D), w_dtype)]
        kernel = _kernel_ntiled_add if has_residual else _kernel_ntiled_noadd
        dim_sem = ("parallel", "arbitrary")
        vmem_needed = vmem_ntiled(tile, tn)

    flops = 2 * rows * D * D + 10 * rows * D
    bytes_accessed = (n_streams * rows * D * in_bytes
                      + D * D * w_bytes + D * 4
                      + rows * D * (in_bytes + res_bytes))
    vmem_limit = int(min(max(vmem_needed * 3 // 2, 32 * _MIB), vmem_limit_cap))

    hs_out, res_out = pl.pallas_call(
        kernel,
        out_shape=(jax.ShapeDtypeStruct((rows, D), in_dtype),
                   jax.ShapeDtypeStruct((rows, D), res_dtype)),
        grid=grid,
        in_specs=in_specs,
        out_specs=out_specs,
        scratch_shapes=scratch_shapes,
        compiler_params=pltpu.CompilerParams(
            dimension_semantics=dim_sem,
            vmem_limit_bytes=vmem_limit),
        cost_estimate=pl.CostEstimate(
            flops=int(flops),
            transcendentals=int(rows),
            bytes_accessed=int(bytes_accessed)),
    )(*inputs)

    return hs_out.reshape(B, L, D), res_out.reshape(B, L, D)


# ---------------------------------- verification ---------------------------------------

def _reference(hidden_states, residual, params):
    # Pure-JAX reference of the same forward pass.
    h = hidden_states.astype(jnp.float32)
    r = h if residual is None else h + residual.astype(jnp.float32)
    mean = jnp.mean(r, axis=-1, keepdims=True)
    var = jnp.mean((r - mean) ** 2, axis=-1, keepdims=True)
    n = (r - mean) * jax.lax.rsqrt(var + EPS)
    n = n * params["norm_weight"] + params["norm_bias"]
    hs = n @ params["mixer_weight"] + params["mixer_bias"]
    return hs, r


def _make_params(key, D):
    k_w, k_b = jax.random.split(key)
    return {
        # Non-trivial LN affine so that the host-side folding is actually exercised.
        "norm_weight": jnp.full((D,), 1.1, jnp.float32),
        "norm_bias": jnp.full((D,), 0.05, jnp.float32),
        "mixer_weight": jax.random.normal(k_w, (D, D), jnp.float32) * 0.05,
        "mixer_bias": jax.random.normal(k_b, (D,), jnp.float32) * 0.01,
    }


if __name__ == "__main__":
    key = jax.random.PRNGKey(0)
    ks = jax.random.split(key, 8)

    # --- small shape consistent with the module: (batch=2, seq=8, dim=32) --------------
    B, L, D = 2, 8, 32
    hidden_states = jax.random.normal(ks[0], (B, L, D), jnp.float32)
    residual = jax.random.normal(ks[1], (B, L, D), jnp.float32)
    params = _make_params(ks[2], D)

    fwd_f32 = jax.jit(partial(block_forward, residual_in_fp32=True,
                              mixer_dtype=jnp.float32))
    hs_out, res_out = jax.block_until_ready(fwd_f32(hidden_states, residual, params))

    hs_ref, res_ref = _reference(hidden_states, residual, params)
    assert hs_out.shape == (B, L, D) and res_out.shape == (B, L, D)
    assert res_out.dtype == jnp.float32
    assert jnp.allclose(hs_out, hs_ref, atol=1e-4, rtol=1e-4)
    assert jnp.allclose(res_out, res_ref, atol=1e-5, rtol=1e-5)

    # --- residual=None branch (dedicated kernel, no zeros stream) ----------------------
    hs0, res0 = jax.block_until_ready(
        block_forward(hidden_states, None, params, mixer_dtype=jnp.float32))
    hs_ref0, res_ref0 = _reference(hidden_states, None, params)
    assert jnp.allclose(hs0, hs_ref0, atol=1e-4, rtol=1e-4)
    assert jnp.allclose(res0, res_ref0, atol=1e-5, rtol=1e-5)

    # --- default bf16 mixer-weight path (f32 accumulation on the MXU) ------------------
    hs_bf, res_bf = jax.block_until_ready(block_forward(hidden_states, residual, params))
    assert jnp.allclose(hs_bf, hs_ref, atol=5e-2, rtol=5e-2)
    assert jnp.allclose(res_bf, res_ref, atol=1e-5, rtol=1e-5)

    # --- boundary-masked rows: rows (300) not a multiple of the tile -------------------
    B2, L2, D2 = 1, 300, 128
    h_big = jax.random.normal(ks[3], (B2, L2, D2), jnp.float32)
    r_big = jax.random.normal(ks[4], (B2, L2, D2), jnp.float32)
    params2 = _make_params(ks[5], D2)
    hs_b, res_b = jax.block_until_ready(
        block_forward(h_big, r_big, params2, mixer_dtype=jnp.float32))
    hs_rb, res_rb = _reference(h_big, r_big, params2)
    assert hs_b.shape == (B2, L2, D2)
    assert jnp.allclose(hs_b, hs_rb, atol=1e-3, rtol=1e-3)
    assert jnp.allclose(res_b, res_rb, atol=1e-5, rtol=1e-5)

    # --- forced N-tiled weight path (2-D grid, LN output cached in VMEM scratch) -------
    B3, L3, D3 = 2, 40, 256
    h3 = jax.random.normal(ks[6], (B3, L3, D3), jnp.float32)
    r3 = jax.random.normal(ks[7], (B3, L3, D3), jnp.float32)
    params3 = _make_params(jax.random.PRNGKey(1), D3)
    hs_t, res_t = jax.block_until_ready(
        block_forward(h3, r3, params3, mixer_dtype=jnp.float32, n_tile=128))
    hs_rt, res_rt = _reference(h3, r3, params3)
    assert jnp.allclose(hs_t, hs_rt, atol=1e-3, rtol=1e-3)
    assert jnp.allclose(res_t, res_rt, atol=1e-5, rtol=1e-5)

    print("KERNEL_OK")
</pallas_src>

<mosaic_0001>
module attributes {stable_mosaic.version = 11 : i64} {
  func.func @_kernel_resident_add(%arg0: i32, %arg1: memref<16x32xf32, #tpu.memory_space<vmem>>, %arg2: memref<16x32xf32, #tpu.memory_space<vmem>>, %arg3: memref<32x32xf32, #tpu.memory_space<vmem>>, %arg4: memref<1x32xf32, #tpu.memory_space<vmem>>, %arg5: memref<16x32xf32, #tpu.memory_space<vmem>>, %arg6: memref<16x32xf32, #tpu.memory_space<vmem>>) attributes {dimension_semantics = [#tpu.dimension_semantics<parallel>], iteration_bounds = array<i64: 1>, scalar_prefetch = 0 : i64, scratch_operands = 0 : i64, tpu.core_type = #tpu.core_type<tc>, window_params = [{transform_indices = @transform_0, window_bounds = array<i64: 16, 32>}, {transform_indices = @transform_1, window_bounds = array<i64: 16, 32>}, {pipeline_mode = #tpu.pipeline_mode<synchronous>, transform_indices = @transform_2, window_bounds = array<i64: 32, 32>}, {pipeline_mode = #tpu.pipeline_mode<synchronous>, transform_indices = @transform_3, window_bounds = array<i64: 1, 32>}, {transform_indices = @transform_4, window_bounds = array<i64: 16, 32>}, {transform_indices = @transform_5, window_bounds = array<i64: 16, 32>}]} {
    %c0 = arith.constant 0 : index
    %c0_0 = arith.constant 0 : index
    %0 = vector.load %arg1[%c0, %c0_0] : memref<16x32xf32, #tpu.memory_space<vmem>>, vector<16x32xf32>
    %c0_1 = arith.constant 0 : index
    %c0_2 = arith.constant 0 : index
    %1 = vector.load %arg2[%c0_1, %c0_2] : memref<16x32xf32, #tpu.memory_space<vmem>>, vector<16x32xf32>
    %2 = arith.addf %0, %1 : vector<16x32xf32>
    %cst = arith.constant dense<0.000000e+00> : vector<16xf32>
    %3 = vector.multi_reduction <add>, %2, %cst [1] : vector<16x32xf32> to vector<16xf32>
    %4 = vector.shape_cast %3 : vector<16xf32> to vector<16x1xf32>
    %5 = arith.mulf %2, %2 : vector<16x32xf32>
    %cst_3 = arith.constant dense<0.000000e+00> : vector<16xf32>
    %6 = vector.multi_reduction <add>, %5, %cst_3 [1] : vector<16x32xf32> to vector<16xf32>
    %7 = vector.shape_cast %6 : vector<16xf32> to vector<16x1xf32>
    %cst_4 = arith.constant 3.125000e-02 : f32
    %8 = vector.broadcast %cst_4 : f32 to vector<16x1xf32>
    %9 = arith.mulf %4, %8 : vector<16x1xf32>
    %cst_5 = arith.constant 3.125000e-02 : f32
    %10 = vector.broadcast %cst_5 : f32 to vector<16x1xf32>
    %11 = arith.mulf %7, %10 : vector<16x1xf32>
    %12 = arith.mulf %9, %9 : vector<16x1xf32>
    %13 = arith.subf %11, %12 : vector<16x1xf32>
    %cst_6 = arith.constant 0.000000e+00 : f32
    %14 = vector.broadcast %cst_6 : f32 to vector<16x1xf32>
    %15 = arith.maximumf %13, %14 : vector<16x1xf32>
    %16 = vector.broadcast %9 : vector<16x1xf32> to vector<16x32xf32>
    %17 = arith.subf %2, %16 : vector<16x32xf32>
    %cst_7 = arith.constant 9.99999974E-6 : f32
    %18 = vector.broadcast %cst_7 : f32 to vector<16x1xf32>
    %19 = arith.addf %15, %18 : vector<16x1xf32>
    %20 = math.rsqrt %19 : vector<16x1xf32>
    %21 = vector.broadcast %20 : vector<16x1xf32> to vector<16x32xf32>
    %22 = arith.mulf %17, %21 : vector<16x32xf32>
    %c0_8 = arith.constant 0 : index
    %c0_9 = arith.constant 0 : index
    %23 = vector.load %arg3[%c0_8, %c0_9] : memref<32x32xf32, #tpu.memory_space<vmem>>, vector<32x32xf32>
    %cst_10 = arith.constant dense<0.000000e+00> : vector<16x32xf32>
    %24 = tpu.matmul %22, %23, %cst_10 {dimension_numbers = #tpu.dot_dimension_numbers<[1], [0], [0], [1], [0, 0, 1, 1], [], []>} : vector<16x32xf32>, vector<32x32xf32>, vector<16x32xf32> -> vector<16x32xf32>
    %c0_11 = arith.constant 0 : index
    %c0_12 = arith.constant 0 : index
    %25 = vector.load %arg4[%c0_11, %c0_12] : memref<1x32xf32, #tpu.memory_space<vmem>>, vector<1x32xf32>
    %26 = vector.broadcast %25 : vector<1x32xf32> to vector<16x32xf32>
    %27 = arith.addf %24, %26 : vector<16x32xf32>
    %c0_13 = arith.constant 0 : index
    %c0_14 = arith.constant 0 : index
    %28 = vector.load %arg5[%c0_13, %c0_14] : memref<16x32xf32, #tpu.memory_space<vmem>>, vector<16x32xf32>
    tpu.vector_store %arg5[%c0_13, %c0_14], %27 {strides = array<i32>} : memref<16x32xf32, #tpu.memory_space<vmem>>, vector<16x32xf32>,
    %c0_15 = arith.constant 0 : index
    %c0_16 = arith.constant 0 : index
    %29 = vector.load %arg6[%c0_15, %c0_16] : memref<16x32xf32, #tpu.memory_space<vmem>>, vector<16x32xf32>
    tpu.vector_store %arg6[%c0_15, %c0_16], %2 {strides = array<i32>} : memref<16x32xf32, #tpu.memory_space<vmem>>, vector<16x32xf32>,
    return
  }
  func.func @transform_0(%arg0: i32) -> (i32, i32) {
    %c0_i32 = arith.constant 0 : i32
    %c0_i32_0 = arith.constant 0 : i32
    return %arg0, %c0_i32 : i32, i32
  }
  func.func @transform_1(%arg0: i32) -> (i32, i32) {
    %c0_i32 = arith.constant 0 : i32
    %c0_i32_0 = arith.constant 0 : i32
    return %arg0, %c0_i32 : i32, i32
  }
  func.func @transform_2(%arg0: i32) -> (i32, i32) {
    %c0_i32 = arith.constant 0 : i32
    %c0_i32_0 = arith.constant 0 : i32
    %c0_i32_1 = arith.constant 0 : i32
    return %c0_i32, %c0_i32_0 : i32, i32
  }
  func.func @transform_3(%arg0: i32) -> (i32, i32) {
    %c0_i32 = arith.constant 0 : i32
    %c0_i32_0 = arith.constant 0 : i32
    %c0_i32_1 = arith.constant 0 : i32
    return %c0_i32, %c0_i32_0 : i32, i32
  }
  func.func @transform_4(%arg0: i32) -> (i32, i32) {
    %c0_i32 = arith.constant 0 : i32
    %c0_i32_0 = arith.constant 0 : i32
    return %arg0, %c0_i32 : i32, i32
  }
  func.func @transform_5(%arg0: i32) -> (i32, i32) {
    %c0_i32 = arith.constant 0 : i32
    %c0_i32_0 = arith.constant 0 : i32
    return %arg0, %c0_i32 : i32, i32
  }
}

</mosaic_0001>

<bundles_post_ra>
// kernel: block_forward.1
= control target key start
LH: loop header
LB: loop body
LE: loop exit
PB: predicated region body
PF: predicated region fallthrough
CT: control target
= control target key end

     0   :  { %11 = vsyncpa [#allocation3], 0  ;;  %vm27_vm0 = vcmask 261120   ;;  %s367_s0 = inlined_call_operand.vmem [shape: f32[16,32], index: 0, kind: input, shape index: {}]   ;;  %s368_s1 = inlined_call_operand.vmem [shape: f32[16,32], index: 1, kind: input, shape index: {}]   ;;  %s369_s2 = inlined_call_operand.vmem [shape: f32[32,32], index: 2, kind: input, shape index: {}]   ;;  %s370_s3 = inlined_call_operand.vmem [shape: f32[1,32], index: 3, kind: input, shape index: {}]   ;;  %s371_s4 = inlined_call_operand.hbm [shape: f32[16,32], index: 4, kind: output, shape index: {0}]   ;;  %s372_s5 = inlined_call_operand.hbm [shape: f32[16,32], index: 5, kind: output, shape index: {1}]  }
   0x1   :  { %v21_v0 = vld [vmem:[%s367_s0] sm:$0xff]  ;;  %v22_v2 = vld [vmem:[%s367_s0 + $0x8] sm:$0xff] }
   0x2   :  { %v23_v1 = vld [vmem:[%s368_s1] sm:$0xff]  ;;  %v24_v4 = vld [vmem:[%s368_s1 + $0x8] sm:$0xff] }
   0x3   :  { %v25_v3 = vadd.f32 %v23_v1, %v21_v0 }
   0x4   :  { %12 = vsyncpa [#allocation5], 0  ;;  %v26_v5 = vadd.f32 %v24_v4, %v22_v2  ;;  %v60_v12 = vld [vmem:[%s369_s2] sm:$0xff]  ;;  %v61_v13 = vld [vmem:[%s369_s2 + $0x8] sm:$0xff] }
   0x5   :  { %v28_v6 = vsel %vm27_vm0, %v25_v3, 0.0  ;;  %154 = vst.msk [vmem:[#allocation4] sm:$0xff] %vm27_vm0, %v25_v3  ;;  %v34_v7 = vmul.f32 %v25_v3, %v25_v3  ;;  %v62_v14 = vld [vmem:[%s369_s2 + $0x10] sm:$0xff]  ;;  %v208_v15 = vpack.c.bf16 %v61_v13, %v60_v12  ;;  %v63_v16 = vld [vmem:[%s369_s2 + $0x18] sm:$0xff]  ;;  %s272_s2 = smov [#allocation4]  }
   0x6   :  { %29 = vadd.xlane.f32.xlu0 %v28_v6  ;;  %155 = vst.msk [vmem:[#allocation4 + $0x8] sm:$0xff] %vm27_vm0, %v26_v5  ;;  %v35_v8 = vmul.f32 %v26_v5, %v26_v5  ;;  %v31_v10 = vsel %vm27_vm0, %v26_v5, 0.0  ;;  %v212_v17 = vpack.c.bf16 %v63_v16, %v62_v14  ;;  %s173_s7 = sshll.u32 %s272_s2, 4  ;;  %s174_s7 = int_to_ptr.vmem [resolvable:$true] %s173_s7 }
   0x7   :  { %v36_v9 = vsel %vm27_vm0, %v34_v7, 0.0  ;;  %209 = vmatprep.subr.bf16.mxu0 %v208_v15  ;;  %s224_s8 = scalar_lea.vmem %s174_s7, 256  ;;  %p229_p1 = scmp.lt.s32.totalorder %s174_s7, %s174_s7 }
   0x8   :  { %37 = vadd.xlane.f32.xlu1 %v36_v9  ;;  %v39_v11 = vsel %vm27_vm0, %v35_v8, 0.0  ;;  %211 = vmatpush3.bf16.msra.mxu0 %v208_v15  ;;  %p225_p0 = scmp.ne.s32.totalorder %s174_s7, %s224_s8  ;;  %p230_p2 = scmp.lt.s32.totalorder %s224_s8, %s224_s8 }
   0x9   :  { %213 = vmatprep.subr.bf16.mxu0 %v212_v17 }
   0xa   :  { %32 = vadd.xlane.f32.xlu0 %v31_v10  ;;  %p231_p3 = por %p230_p2, %p229_p1 }
   0xc   :  { %40 = vadd.xlane.f32.xlu1 %v39_v11  ;;  %215 = vmatpush3.bf16.msra.mxu0 %v212_v17  ;;  %p232_p4 = pnand %p231_p3, %p225_p0 }
  0x93   :  { %v30_v18 = vpop.xlane.xlu0 %29 }
  0x94   :  { %v42_v19 = vmul.f32 0.03125, %v30_v18 }
  0x95   :  { %v38_v20 = vpop.xlane.xlu1 %37 }
  0x96   :  { %v46_v21 = vmul.f32 %v42_v19, %v42_v19  ;;  %v44_v22 = vmul.f32 0.03125, %v38_v20  ;;  %v52_v34 = vsub.f32 %v25_v3, %v42_v19 }
  0x97   :  { %v33_v23 = vpop.xlane.xlu0 %32 }
  0x98   :  { %v48_v24 = vsub.f32 %v44_v22, %v46_v21  ;;  %v43_v25 = vmul.f32 0.03125, %v33_v23 }
  0x99   :  { %v41_v26 = vpop.xlane.xlu1 %40 }
  0x9a   :  { %v50_v27 = vmax.f32 %v48_v24, 0.0  ;;  %v47_v28 = vmul.f32 %v43_v25, %v43_v25  ;;  %v45_v29 = vmul.f32 0.03125, %v41_v26  ;;  %v53_v37 = vsub.f32 %v26_v5, %v43_v25 }
  0x9c   :  { %v54_v30 = vadd.f32 1e-05, %v50_v27  ;;  %v49_v31 = vsub.f32 %v45_v29, %v47_v28 }
  0x9e   :  { %220 = vrsqrt.f32 %v54_v30  ;;  %v51_v32 = vmax.f32 %v49_v31, 0.0 }
  0xa0   :  { %v55_v33 = vadd.f32 1e-05, %v51_v32 }
  0xa2   :  { %222 = vrsqrt.f32 %v55_v33 }
  0xa8   :  { %v221_v35 = vpop.eup %220 }
  0xa9   :  { %v58_v36 = vmul.f32 %v221_v35, %v52_v34 }
  0xab   :  { %205 = vmatprep.mubr.msk.f32.mxu0 %vm27_vm0, %v58_v36 }
  0xac   :  { %v223_v38 = vpop.eup %222 }
  0xad   :  { %v59_v39 = vmul.f32 %v223_v38, %v53_v37 }
  0xaf   :  { %206 = vmatmul.mubr.msk.f32.vlgmr.msra.gmra.mrb[0].mxu0 %vm27_vm0, %v59_v39 }
  0xb0   :  { %235 = shalt.err (!%p232_p4)
}
  0xb1   :  { %s236_s11 = scalar_lea.hbm %s372_s5, 256 }
  0xb2   :  { %p237_p5 = scmp.ne.s32.totalorder %s372_s5, %s236_s11  ;;  %p240_p6 = scmp.lt.u32.totalorder %s236_s11, %s372_s5 }
  0xb4   :  { %p242_p7 = pnand %p240_p6, %p237_p5 }
  0xb6   :  { %245 = shalt.err (!%p242_p7)
}
  0xb7   :  { %s273_s16 = smov 128   ;;  %s274_s17 = smov 8   ;;  %v188_v40 = vld [vmem:[%s370_s3] ss:$0 sm:$0xff] }
  0xb8   :  { %179 = dma.vmem_to_hbm [thread:$0]  %s174_s7, 256, %s372_s5, [#allocation5], %s273_s16, %s273_s16, %s274_s17  }
  0xb9   :  { %s275_s22 = smov [#allocation2]  }
  0xba   :  { %s161_s23 = sshll.u32 %s275_s22, 4  ;;  %s162_s23 = int_to_ptr.vmem [resolvable:$true] %s161_s23 }
  0xbb   :  { %s246_s24 = scalar_lea.vmem %s162_s23, 256  ;;  %p251_p9 = scmp.lt.s32.totalorder %s162_s23, %s162_s23 }
  0xbc   :  { %p247_p8 = scmp.ne.s32.totalorder %s162_s23, %s246_s24  ;;  %p252_p10 = scmp.lt.s32.totalorder %s246_s24, %s246_s24 }
  0xbe   :  { %p253_p11 = por %p252_p10, %p251_p9 }
  0xc0   :  { %p254_p12 = pnand %p253_p11, %p247_p8 }
 0x182   :  { %v207_v41 = vpop.f32.mrb[0].mxu0 }
 0x183   :  { %v149_v42 = vadd.f32 %v207_v41, %v188_v40  ;;  %v143_v43 = vpop.f32.mrb[1].mxu0 }
 0x184   :  { %v144_v44 = vadd.f32 %v188_v40, %v143_v43 }
 0x185   :  { %153 = vst.msk [vmem:[#allocation2 + $0x8] sm:$0xff] %vm27_vm0, %v149_v42 }
 0x186   :  { %152 = vst.msk [vmem:[#allocation2] sm:$0xff] %vm27_vm0, %v144_v44 }
 0x187   :  { %257 = shalt.err (!%p254_p12)
}
 0x188   :  { %s258_s25 = scalar_lea.hbm %s371_s4, 256 }
 0x189   :  { %p259_p13 = scmp.ne.s32.totalorder %s371_s4, %s258_s25  ;;  %p262_p0 = scmp.lt.u32.totalorder %s258_s25, %s371_s4 }
 0x18b   :  { %p264_p1 = pnand %p262_p0, %p259_p13 }
 0x18d   :  { %267 = shalt.err (!%p264_p1)
}
 0x18e   :  { %167 = dma.vmem_to_hbm [thread:$0]  %s162_s23, 256, %s371_s4, [#allocation3], %s273_s16, %s273_s16, %s274_s17  }
 0x18f   :  { %268 = dma.done.wait [#allocation3], 256  }
 0x190   :  { %269 = vsyncadd [#allocation3], 4294967040 }
 0x191   :  { %270 = dma.done.wait [#allocation5], 256  }
 0x192   :  { %271 = vsyncadd [#allocation5], 4294967040 }
 0x193   :  { %186 = vsyncpa [#allocation3], 1 }
 0x194   :  { %187 = vsyncpa [#allocation5], 1 }

</bundles_post_ra>
